<compile_context>
chip_gen: v7x
topology: tpu7x:2x2x1
jax: 0.10.0
libtpu: 0.0.40
codegen_flags: <defaults>
</compile_context>

<pallas_src>
import functools
import math

import jax
import jax.numpy as jnp
from jax.experimental import pallas as pl
from jax.experimental.pallas import tpu as pltpu

# ---------------------------------------------------------------------------
# "config" fields read by _FlashAttention2.__init__ (small synthetic sizes)
# ---------------------------------------------------------------------------
HIDDEN_SIZE = 32
NUM_HEADS = 4
NUM_KV_HEADS = 2
HEAD_DIM = HIDDEN_SIZE // NUM_HEADS            # 8
NUM_KV_GROUPS = NUM_HEADS // NUM_KV_HEADS      # 2
ROPE_THETA = 100000.0
BATCH = 2
SEQ = 16
# bf16 model dtype -> the module's fp32->fp16 downcast branch (a CUDA flash-attn
# workaround) is not taken, matching the intended mixed-precision path.
DTYPE = jnp.bfloat16


# ---------------------------------------------------------------------------
# Projection matmul kernel
# ---------------------------------------------------------------------------
def _matmul_kernel(x_ref, w_ref, o_ref):
    o_ref[...] = jnp.dot(
        x_ref[...], w_ref[...], preferred_element_type=jnp.float32
    ).astype(o_ref.dtype)


def pallas_matmul(x, w):
    """x:(M,K) @ w:(K,N) -> (M,N).  Toy shapes: single full-array block.

    TODO(synk): at real hidden sizes, tile as (tm,tk)x(tk,tn) with K as a trailing
    'arbitrary' grid axis, an f32 VMEM accumulator in scratch_shapes, parallel M/N
    axes, tm=tn=256 on v6e/v7x (128 on v5e), tn a multiple of 128 for unmasked
    stores, and vmem_limit_bytes budgeted against v7x's 64 MiB VMEM.
    """
    M, K = x.shape
    _, N = w.shape
    return pl.pallas_call(
        _matmul_kernel,
        out_shape=jax.ShapeDtypeStruct((M, N), x.dtype),
        grid=(1,),
        in_specs=[
            pl.BlockSpec((M, K), lambda i: (0, 0)),
            pl.BlockSpec((K, N), lambda i: (0, 0)),
        ],
        out_specs=pl.BlockSpec((M, N), lambda i: (0, 0)),
    )(x, w)


# ---------------------------------------------------------------------------
# Fused RoPE + causal GQA flash-attention kernel
# ---------------------------------------------------------------------------
def _rope_flash_attn_kernel(q_ref, k_ref, v_ref, cos_ref, sin_ref,
                            o_ref, krot_ref, *,
                            num_heads, num_kv_heads, head_dim, scale):
    """One batch element; layouts are the natural fused-QKV-split layouts.

    q_ref   : (1, S, H*D)    bf16
    k_ref   : (1, S, KVH*D)  bf16
    v_ref   : (1, S, KVH*D)  bf16
    cos_ref : (1, S, D)      f32
    sin_ref : (1, S, D)      f32
    o_ref   : (1, S, H*D)    bf16   attention output in (B,S,hidden) layout
    krot_ref: (1, S, KVH*D)  bf16   RoPE'd keys (key_cache), same layout as k
    """
    H, KVH, D = num_heads, num_kv_heads, head_dim
    G = H // KVH
    S = q_ref.shape[1]
    d2 = D // 2

    q = q_ref[0].astype(jnp.float32)        # (S, H*D)
    k = k_ref[0].astype(jnp.float32)        # (S, KVH*D)
    v = v_ref[0]                            # (S, KVH*D) bf16
    cos = cos_ref[0]                        # (S, D) f32
    sin = sin_ref[0]                        # (S, D) f32

    def rope(x):                            # (S, D) f32 -> (S, D) f32
        # rotate_half via lane slice+concat (tiny D=8 segments here); at real
        # head_dim=128 this becomes a single pltpu.roll(x, D//2, axis=-1) with a
        # sign-folded sin table (XLU slot, free under MXU work).
        rot = jnp.concatenate([-x[:, d2:], x[:, :d2]], axis=-1)
        return x * cos + rot * sin

    # Rotate each kv head once; single lane-dense store for the key cache.
    k_rot_f32 = [rope(k[:, h * D:(h + 1) * D]) for h in range(KVH)]
    krot_ref[0] = jnp.concatenate(k_rot_f32, axis=-1).astype(krot_ref.dtype)
    k_rot = [x.astype(v.dtype) for x in k_rot_f32]        # bf16 for the MXU

    # Causal mask built once per invocation, shared across all H heads.
    q_pos = jax.lax.broadcasted_iota(jnp.int32, (S, S), 0)
    k_pos = jax.lax.broadcasted_iota(jnp.int32, (S, S), 1)
    causal = q_pos >= k_pos
    neg_inf = jnp.float32(-jnp.inf)

    outs = []
    for h in range(H):        # static unroll; K/V tiles already resident in VMEM
        kvh = h // G
        q_h = rope(q[:, h * D:(h + 1) * D]).astype(v.dtype)        # (S, D) bf16

        # QK^T: bf16 operands on the MXU, f32 accumulation; transposed-RHS
        # contraction avoids an explicit in-kernel k transpose.
        s = jax.lax.dot_general(
            q_h, k_rot[kvh], (((1,), (1,)), ((), ())),
            preferred_element_type=jnp.float32)                    # (S, S) f32

        # Softmax scale applied to the f32 score tile (full precision, in-kernel).
        s = jnp.where(causal, s * scale, neg_inf)

        # Single-shot softmax (whole KV range resident). Every row contains its
        # diagonal so the max is finite -> no NaN guard needed on this path.
        m = jnp.max(s, axis=-1, keepdims=True)
        p = jnp.exp(s - m)
        l = jnp.sum(p, axis=-1, keepdims=True)

        pv = jnp.dot(p.astype(v.dtype), v[:, kvh * D:(kvh + 1) * D],
                     preferred_element_type=jnp.float32)           # (S, D) f32
        # Exact reciprocal: epilogue runs once per head per tile, essentially free.
        outs.append(pv * pl.reciprocal(l, approx=False))

    # One concatenated full-block store (no per-head masked partial stores).
    o_ref[0] = jnp.concatenate(outs, axis=-1).astype(o_ref.dtype)


def pallas_rope_flash_attention(q, k, v, cos, sin, *, num_heads, num_kv_heads,
                                head_dim, softmax_scale=None):
    """q:(B,S,H*D), k/v:(B,S,KVH*D), cos/sin:(B,S,D)
       -> (attn:(B,S,H*D), k_rot:(B,S,KVH*D)).  Causal GQA attention, RoPE fused.

    Grid = (B,) with a single 'parallel' axis: one step per TensorCore on v7x,
    only B serial steps on single-TC v5e/v6e (each step now handles all KV groups,
    so every K/V block is fetched exactly once).

    TODO(synk): for real sequence lengths add a q-tile grid axis (Sq in multiples
    of 256 for the v6e/v7x MXU, 128 on v5e), a kv axis with online softmax and
    skipping of fully-masked blocks above the causal diagonal, and re-derive the
    VMEM budget / vmem_limit_bytes for v7x's 64 MiB VMEM.
    """
    B, S, _ = q.shape
    scale = softmax_scale if softmax_scale is not None else 1.0 / math.sqrt(head_dim)
    kernel = functools.partial(
        _rope_flash_attn_kernel, num_heads=num_heads, num_kv_heads=num_kv_heads,
        head_dim=head_dim, scale=scale)
    return pl.pallas_call(
        kernel,
        out_shape=(jax.ShapeDtypeStruct(q.shape, q.dtype),
                   jax.ShapeDtypeStruct(k.shape, k.dtype)),
        grid=(B,),
        in_specs=[
            pl.BlockSpec((1, S, q.shape[-1]), lambda b: (b, 0, 0)),
            pl.BlockSpec((1, S, k.shape[-1]), lambda b: (b, 0, 0)),
            pl.BlockSpec((1, S, v.shape[-1]), lambda b: (b, 0, 0)),
            pl.BlockSpec((1, S, cos.shape[-1]), lambda b: (b, 0, 0)),
            pl.BlockSpec((1, S, sin.shape[-1]), lambda b: (b, 0, 0)),
        ],
        out_specs=(
            pl.BlockSpec((1, S, q.shape[-1]), lambda b: (b, 0, 0)),
            pl.BlockSpec((1, S, k.shape[-1]), lambda b: (b, 0, 0)),
        ),
        compiler_params=pltpu.CompilerParams(dimension_semantics=("parallel",)),
    )(q, k, v, cos, sin)


# ---------------------------------------------------------------------------
# RoPE tables (matches _RotaryEmbedding.forward; tiny, computed in f32)
# ---------------------------------------------------------------------------
def rotary_tables(position_ids, dim, base):
    inv_freq = 1.0 / (base ** (jnp.arange(0, dim, 2, dtype=jnp.float32) / dim))
    freqs = position_ids[:, :, None].astype(jnp.float32) * inv_freq[None, None, :]
    emb = jnp.concatenate((freqs, freqs), axis=-1)          # (B, S, dim)
    return jnp.cos(emb), jnp.sin(emb)


# ---------------------------------------------------------------------------
# Forward pass of _FlashAttention2 (training / non-inference path)
# ---------------------------------------------------------------------------
def flash_attention2_forward(hidden_states, position_ids, w_qkv_t, w_o_t):
    """w_qkv_t:(hidden, op_size), w_o_t:(H*hd, hidden) — weights pre-transposed once."""
    bsz, q_len, hidden = hidden_states.shape
    H, KVH, hd = NUM_HEADS, NUM_KV_HEADS, HEAD_DIM

    # fused qkv projection (torch Linear y = x @ W^T; W^T materialized once outside)
    qkv = pallas_matmul(hidden_states.reshape(bsz * q_len, hidden), w_qkv_t)
    qkv = qkv.reshape(bsz, q_len, -1)
    query_pos = H * hd
    q = qkv[..., :query_pos]                             # (B, S, H*hd)
    k = qkv[..., query_pos:query_pos + KVH * hd]         # (B, S, KVH*hd)
    v = qkv[..., query_pos + KVH * hd:]                  # (B, S, KVH*hd)

    cos, sin = rotary_tables(position_ids, hd, ROPE_THETA)

    # RoPE + softmax scale + causal GQA attention fused in one Pallas kernel;
    # consumes and produces the natural (B, S, heads*hd) layout -> no transposes.
    attn, k_rot = pallas_rope_flash_attention(
        q, k, v, cos, sin, num_heads=H, num_kv_heads=KVH, head_dim=hd)

    # non-inference path: caches == current (B, S, KVH, hd) states (reshapes free).
    # TODO(synk): inference-mode in-place cache update (past_key_value / cur_pos)
    # not implemented; only the non-inference branch of the module is covered.
    key_cache = k_rot.reshape(bsz, q_len, KVH, hd)
    value_cache = v.reshape(bsz, q_len, KVH, hd)

    # TODO(synk): attention_dropout only applies in training mode; eval path (p=0.0).
    out = pallas_matmul(attn.reshape(bsz * q_len, H * hd), w_o_t)
    return out.reshape(bsz, q_len, hidden), key_cache, value_cache


# ---------------------------------------------------------------------------
# Pure-JAX reference (fp32) for a sanity check
# ---------------------------------------------------------------------------
def reference_forward(hidden_states, position_ids, w_qkv, w_o):
    x = hidden_states.astype(jnp.float32)
    wq = w_qkv.astype(jnp.float32)
    wo = w_o.astype(jnp.float32)
    bsz, q_len, hidden = x.shape
    H, KVH, hd = NUM_HEADS, NUM_KV_HEADS, HEAD_DIM

    qkv = x @ wq.T
    query_pos = H * hd
    q = qkv[..., :query_pos].reshape(bsz, q_len, H, hd).transpose(0, 2, 1, 3)
    k = qkv[..., query_pos:query_pos + KVH * hd].reshape(bsz, q_len, KVH, hd).transpose(0, 2, 1, 3)
    v = qkv[..., query_pos + KVH * hd:].reshape(bsz, q_len, KVH, hd).transpose(0, 2, 1, 3)

    cos, sin = rotary_tables(position_ids, hd, ROPE_THETA)
    cosu, sinu = cos[:, None], sin[:, None]

    def rot_half(t):
        return jnp.concatenate((-t[..., hd // 2:], t[..., :hd // 2]), axis=-1)

    q = q * cosu + rot_half(q) * sinu
    k = k * cosu + rot_half(k) * sinu

    G = H // KVH
    k_rep = jnp.repeat(k, G, axis=1)
    v_rep = jnp.repeat(v, G, axis=1)
    s = jnp.einsum("bhqd,bhkd->bhqk", q, k_rep) / math.sqrt(hd)
    mask = jnp.tril(jnp.ones((q_len, q_len), dtype=bool))
    s = jnp.where(mask[None, None], s, -jnp.inf)
    p = jax.nn.softmax(s, axis=-1)
    o = jnp.einsum("bhqk,bhkd->bhqd", p, v_rep)
    o = o.transpose(0, 2, 1, 3).reshape(bsz, q_len, hidden)
    out = o @ wo.T
    key_cache = k.transpose(0, 2, 1, 3)        # (B, S, KVH, hd)
    value_cache = v.transpose(0, 2, 1, 3)      # (B, S, KVH, hd)
    return out, key_cache, value_cache


if __name__ == "__main__":
    key = jax.random.PRNGKey(0)
    k1, k2, k3 = jax.random.split(key, 3)

    op_size = NUM_HEADS * HEAD_DIM + 2 * NUM_KV_HEADS * HEAD_DIM
    w_qkv = (jax.random.normal(k1, (op_size, HIDDEN_SIZE), jnp.float32) * 0.05).astype(DTYPE)
    w_o = (jax.random.normal(k2, (HIDDEN_SIZE, HIDDEN_SIZE), jnp.float32) * 0.05).astype(DTYPE)
    x = jax.random.normal(k3, (BATCH, SEQ, HIDDEN_SIZE), jnp.float32).astype(DTYPE)
    position_ids = jnp.broadcast_to(
        jnp.arange(SEQ, dtype=jnp.int32)[None, :], (BATCH, SEQ))

    # torch Linear stores W:(out, in); transpose once up front so no `.T` is
    # emitted inside the (jitted) forward per call.
    w_qkv_t = jnp.asarray(w_qkv.T)
    w_o_t = jnp.asarray(w_o.T)

    fwd = jax.jit(flash_attention2_forward)
    out, key_cache, value_cache = fwd(x, position_ids, w_qkv_t, w_o_t)
    jax.block_until_ready((out, key_cache, value_cache))

    ref_out, ref_kcache, ref_vcache = reference_forward(x, position_ids, w_qkv, w_o)
    err_o = float(jnp.max(jnp.abs(out.astype(jnp.float32) - ref_out)))
    err_k = float(jnp.max(jnp.abs(key_cache.astype(jnp.float32) - ref_kcache)))
    err_v = float(jnp.max(jnp.abs(value_cache.astype(jnp.float32) - ref_vcache)))
    assert err_o < 3e-2, f"attn output max abs err {err_o}"
    assert err_k < 3e-2, f"key_cache max abs err {err_k}"
    assert err_v < 3e-2, f"value_cache max abs err {err_v}"
    print("KERNEL_OK")
</pallas_src>

<mosaic_0001>
module attributes {stable_mosaic.version = 11 : i64} {
  func.func @_matmul_kernel(%arg0: i32, %arg1: memref<32x32xbf16, #tpu.memory_space<vmem>>, %arg2: memref<32x64xbf16, #tpu.memory_space<vmem>>, %arg3: memref<32x64xbf16, #tpu.memory_space<vmem>>) attributes {dimension_semantics = [#tpu.dimension_semantics<arbitrary>], iteration_bounds = array<i64: 1>, scalar_prefetch = 0 : i64, scratch_operands = 0 : i64, tpu.core_type = #tpu.core_type<tc>, window_params = [{pipeline_mode = #tpu.pipeline_mode<synchronous>, transform_indices = @transform_0, window_bounds = array<i64: 32, 32>}, {pipeline_mode = #tpu.pipeline_mode<synchronous>, transform_indices = @transform_1, window_bounds = array<i64: 32, 64>}, {pipeline_mode = #tpu.pipeline_mode<synchronous>, transform_indices = @transform_2, window_bounds = array<i64: 32, 64>}]} {
    %c0 = arith.constant 0 : index
    %c0_0 = arith.constant 0 : index
    %0 = vector.load %arg1[%c0, %c0_0] : memref<32x32xbf16, #tpu.memory_space<vmem>>, vector<32x32xbf16>
    %c0_1 = arith.constant 0 : index
    %c0_2 = arith.constant 0 : index
    %1 = vector.load %arg2[%c0_1, %c0_2] : memref<32x64xbf16, #tpu.memory_space<vmem>>, vector<32x64xbf16>
    %cst = arith.constant dense<0.000000e+00> : vector<32x64xf32>
    %2 = tpu.matmul %0, %1, %cst {dimension_numbers = #tpu.dot_dimension_numbers<[1], [0], [0], [1], [0, 0, 1, 1], [], []>} : vector<32x32xbf16>, vector<32x64xbf16>, vector<32x64xf32> -> vector<32x64xf32>
    %3 = arith.truncf %2 : vector<32x64xf32> to vector<32x64xbf16>
    %c0_3 = arith.constant 0 : index
    %c0_4 = arith.constant 0 : index
    %4 = vector.load %arg3[%c0_3, %c0_4] : memref<32x64xbf16, #tpu.memory_space<vmem>>, vector<32x64xbf16>
    tpu.vector_store %arg3[%c0_3, %c0_4], %3 {strides = array<i32>} : memref<32x64xbf16, #tpu.memory_space<vmem>>, vector<32x64xbf16>,
    return
  }
  func.func @transform_0(%arg0: i32) -> (i32, i32) {
    %c0_i32 = arith.constant 0 : i32
    %c0_i32_0 = arith.constant 0 : i32
    %c0_i32_1 = arith.constant 0 : i32
    return %c0_i32, %c0_i32_0 : i32, i32
  }
  func.func @transform_1(%arg0: i32) -> (i32, i32) {
    %c0_i32 = arith.constant 0 : i32
    %c0_i32_0 = arith.constant 0 : i32
    %c0_i32_1 = arith.constant 0 : i32
    return %c0_i32, %c0_i32_0 : i32, i32
  }
  func.func @transform_2(%arg0: i32) -> (i32, i32) {
    %c0_i32 = arith.constant 0 : i32
    %c0_i32_0 = arith.constant 0 : i32
    %c0_i32_1 = arith.constant 0 : i32
    return %c0_i32, %c0_i32_0 : i32, i32
  }
}

module attributes {stable_mosaic.version = 11 : i64} {
  func.func @_rope_flash_attn_kernel(%arg0: i32, %arg1: memref<1x16x32xbf16, #tpu.memory_space<vmem>>, %arg2: memref<1x16x16xbf16, #tpu.memory_space<vmem>>, %arg3: memref<1x16x16xbf16, #tpu.memory_space<vmem>>, %arg4: memref<1x16x8xf32, #tpu.memory_space<vmem>>, %arg5: memref<1x16x8xf32, #tpu.memory_space<vmem>>, %arg6: memref<1x16x32xbf16, #tpu.memory_space<vmem>>, %arg7: memref<1x16x16xbf16, #tpu.memory_space<vmem>>) attributes {dimension_semantics = [#tpu.dimension_semantics<parallel>], iteration_bounds = array<i64: 2>, scalar_prefetch = 0 : i64, scratch_operands = 0 : i64, tpu.core_type = #tpu.core_type<tc>, window_params = [{transform_indices = @transform_0, window_bounds = array<i64: 1, 16, 32>}, {transform_indices = @transform_1, window_bounds = array<i64: 1, 16, 16>}, {transform_indices = @transform_2, window_bounds = array<i64: 1, 16, 16>}, {transform_indices = @transform_3, window_bounds = array<i64: 1, 16, 8>}, {transform_indices = @transform_4, window_bounds = array<i64: 1, 16, 8>}, {transform_indices = @transform_5, window_bounds = array<i64: 1, 16, 32>}, {transform_indices = @transform_6, window_bounds = array<i64: 1, 16, 16>}]} {
    %c0 = arith.constant 0 : index
    %c0_0 = arith.constant 0 : index
    %c0_1 = arith.constant 0 : index
    %0 = vector.load %arg1[%c0, %c0_0, %c0_1] : memref<1x16x32xbf16, #tpu.memory_space<vmem>>, vector<1x16x32xbf16>
    %1 = vector.shape_cast %0 : vector<1x16x32xbf16> to vector<16x32xbf16>
    %2 = arith.extf %1 : vector<16x32xbf16> to vector<16x32xf32>
    %c0_2 = arith.constant 0 : index
    %c0_3 = arith.constant 0 : index
    %c0_4 = arith.constant 0 : index
    %3 = vector.load %arg2[%c0_2, %c0_3, %c0_4] : memref<1x16x16xbf16, #tpu.memory_space<vmem>>, vector<1x16x16xbf16>
    %4 = vector.shape_cast %3 : vector<1x16x16xbf16> to vector<16x16xbf16>
    %5 = arith.extf %4 : vector<16x16xbf16> to vector<16x16xf32>
    %c0_5 = arith.constant 0 : index
    %c0_6 = arith.constant 0 : index
    %c0_7 = arith.constant 0 : index
    %6 = vector.load %arg3[%c0_5, %c0_6, %c0_7] : memref<1x16x16xbf16, #tpu.memory_space<vmem>>, vector<1x16x16xbf16>
    %7 = vector.shape_cast %6 : vector<1x16x16xbf16> to vector<16x16xbf16>
    %c0_8 = arith.constant 0 : index
    %c0_9 = arith.constant 0 : index
    %c0_10 = arith.constant 0 : index
    %8 = vector.load %arg4[%c0_8, %c0_9, %c0_10] : memref<1x16x8xf32, #tpu.memory_space<vmem>>, vector<1x16x8xf32>
    %9 = vector.shape_cast %8 : vector<1x16x8xf32> to vector<16x8xf32>
    %c0_11 = arith.constant 0 : index
    %c0_12 = arith.constant 0 : index
    %c0_13 = arith.constant 0 : index
    %10 = vector.load %arg5[%c0_11, %c0_12, %c0_13] : memref<1x16x8xf32, #tpu.memory_space<vmem>>, vector<1x16x8xf32>
    %11 = vector.shape_cast %10 : vector<1x16x8xf32> to vector<16x8xf32>
    %12 = vector.extract_strided_slice %5 {offsets = [0, 0], sizes = [16, 8], strides = [1, 1]} : vector<16x16xf32> to vector<16x8xf32>
    %13 = vector.extract_strided_slice %12 {offsets = [0, 4], sizes = [16, 4], strides = [1, 1]} : vector<16x8xf32> to vector<16x4xf32>
    %cst = arith.constant 0.000000e+00 : f32
    %14 = vector.broadcast %cst : f32 to vector<16x4xf32>
    %15 = arith.subf %14, %13 : vector<16x4xf32>
    %16 = vector.extract_strided_slice %12 {offsets = [0, 0], sizes = [16, 4], strides = [1, 1]} : vector<16x8xf32> to vector<16x4xf32>
    %17 = tpu.concatenate %15, %16 in 1 : vector<16x4xf32>, vector<16x4xf32> -> vector<16x8xf32>
    %18 = arith.mulf %12, %9 : vector<16x8xf32>
    %19 = arith.mulf %17, %11 : vector<16x8xf32>
    %20 = arith.addf %18, %19 : vector<16x8xf32>
    %21 = vector.extract_strided_slice %5 {offsets = [0, 8], sizes = [16, 8], strides = [1, 1]} : vector<16x16xf32> to vector<16x8xf32>
    %22 = vector.extract_strided_slice %21 {offsets = [0, 4], sizes = [16, 4], strides = [1, 1]} : vector<16x8xf32> to vector<16x4xf32>
    %cst_14 = arith.constant 0.000000e+00 : f32
    %23 = vector.broadcast %cst_14 : f32 to vector<16x4xf32>
    %24 = arith.subf %23, %22 : vector<16x4xf32>
    %25 = vector.extract_strided_slice %21 {offsets = [0, 0], sizes = [16, 4], strides = [1, 1]} : vector<16x8xf32> to vector<16x4xf32>
    %26 = tpu.concatenate %24, %25 in 1 : vector<16x4xf32>, vector<16x4xf32> -> vector<16x8xf32>
    %27 = arith.mulf %21, %9 : vector<16x8xf32>
    %28 = arith.mulf %26, %11 : vector<16x8xf32>
    %29 = arith.addf %27, %28 : vector<16x8xf32>
    %30 = tpu.concatenate %20, %29 in 1 : vector<16x8xf32>, vector<16x8xf32> -> vector<16x16xf32>
    %31 = arith.truncf %30 : vector<16x16xf32> to vector<16x16xbf16>
    %c0_15 = arith.constant 0 : index
    %c0_16 = arith.constant 0 : index
    %c0_17 = arith.constant 0 : index
    %32 = vector.load %arg7[%c0_15, %c0_16, %c0_17] : memref<1x16x16xbf16, #tpu.memory_space<vmem>>, vector<1x16x16xbf16>
    %33 = vector.shape_cast %32 : vector<1x16x16xbf16> to vector<16x16xbf16>
    %34 = vector.shape_cast %31 : vector<16x16xbf16> to vector<1x16x16xbf16>
    tpu.vector_store %arg7[%c0_15, %c0_16, %c0_17], %34 {strides = array<i32>} : memref<1x16x16xbf16, #tpu.memory_space<vmem>>, vector<1x16x16xbf16>,
    %35 = arith.truncf %20 : vector<16x8xf32> to vector<16x8xbf16>
    %36 = arith.truncf %29 : vector<16x8xf32> to vector<16x8xbf16>
    %37 = tpu.iota {dimensions = array<i32: 0>} : vector<16x16xi32>
    %38 = tpu.iota {dimensions = array<i32: 1>} : vector<16x16xi32>
    %39 = arith.cmpi sge, %37, %38 : vector<16x16xi32>
    %40 = vector.extract_strided_slice %2 {offsets = [0, 0], sizes = [16, 8], strides = [1, 1]} : vector<16x32xf32> to vector<16x8xf32>
    %41 = vector.extract_strided_slice %40 {offsets = [0, 4], sizes = [16, 4], strides = [1, 1]} : vector<16x8xf32> to vector<16x4xf32>
    %cst_18 = arith.constant 0.000000e+00 : f32
    %42 = vector.broadcast %cst_18 : f32 to vector<16x4xf32>
    %43 = arith.subf %42, %41 : vector<16x4xf32>
    %44 = vector.extract_strided_slice %40 {offsets = [0, 0], sizes = [16, 4], strides = [1, 1]} : vector<16x8xf32> to vector<16x4xf32>
    %45 = tpu.concatenate %43, %44 in 1 : vector<16x4xf32>, vector<16x4xf32> -> vector<16x8xf32>
    %46 = arith.mulf %40, %9 : vector<16x8xf32>
    %47 = arith.mulf %45, %11 : vector<16x8xf32>
    %48 = arith.addf %46, %47 : vector<16x8xf32>
    %49 = arith.truncf %48 : vector<16x8xf32> to vector<16x8xbf16>
    %cst_19 = arith.constant dense<0.000000e+00> : vector<16x16xf32>
    %50 = tpu.matmul %49, %35, %cst_19 {dimension_numbers = #tpu.dot_dimension_numbers<[1], [1], [0], [0], [0, 0, 1, 0], [], []>} : vector<16x8xbf16>, vector<16x8xbf16>, vector<16x16xf32> -> vector<16x16xf32>
    %cst_20 = arith.constant 0.353553385 : f32
    %51 = vector.broadcast %cst_20 : f32 to vector<16x16xf32>
    %52 = arith.mulf %50, %51 : vector<16x16xf32>
    %cst_21 = arith.constant 0xFF800000 : f32
    %53 = vector.broadcast %cst_21 : f32 to vector<16x16xf32>
    %54 = arith.select %39, %52, %53 : vector<16x16xi1>, vector<16x16xf32>
    %cst_22 = arith.constant dense<0xFF800000> : vector<16xf32>
    %55 = vector.multi_reduction <maximumf>, %54, %cst_22 [1] : vector<16x16xf32> to vector<16xf32>
    %56 = vector.shape_cast %55 : vector<16xf32> to vector<16x1xf32>
    %57 = vector.broadcast %56 : vector<16x1xf32> to vector<16x16xf32>
    %58 = arith.subf %54, %57 : vector<16x16xf32>
    %59 = math.exp %58 : vector<16x16xf32>
    %cst_23 = arith.constant dense<0.000000e+00> : vector<16xf32>
    %60 = vector.multi_reduction <add>, %59, %cst_23 [1] : vector<16x16xf32> to vector<16xf32>
    %61 = vector.shape_cast %60 : vector<16xf32> to vector<16x1xf32>
    %62 = arith.truncf %59 : vector<16x16xf32> to vector<16x16xbf16>
    %63 = vector.extract_strided_slice %7 {offsets = [0, 0], sizes = [16, 8], strides = [1, 1]} : vector<16x16xbf16> to vector<16x8xbf16>
    %cst_24 = arith.constant dense<0.000000e+00> : vector<16x8xf32>
    %64 = tpu.matmul %62, %63, %cst_24 {dimension_numbers = #tpu.dot_dimension_numbers<[1], [0], [0], [1], [0, 0, 1, 1], [], []>} : vector<16x16xbf16>, vector<16x8xbf16>, vector<16x8xf32> -> vector<16x8xf32>
    %65 = tpu.reciprocal %61 : vector<16x1xf32> -> vector<16x1xf32>
    %66 = vector.broadcast %65 : vector<16x1xf32> to vector<16x8xf32>
    %67 = arith.mulf %64, %66 : vector<16x8xf32>
    %68 = vector.extract_strided_slice %2 {offsets = [0, 8], sizes = [16, 8], strides = [1, 1]} : vector<16x32xf32> to vector<16x8xf32>
    %69 = vector.extract_strided_slice %68 {offsets = [0, 4], sizes = [16, 4], strides = [1, 1]} : vector<16x8xf32> to vector<16x4xf32>
    %cst_25 = arith.constant 0.000000e+00 : f32
    %70 = vector.broadcast %cst_25 : f32 to vector<16x4xf32>
    %71 = arith.subf %70, %69 : vector<16x4xf32>
    %72 = vector.extract_strided_slice %68 {offsets = [0, 0], sizes = [16, 4], strides = [1, 1]} : vector<16x8xf32> to vector<16x4xf32>
    %73 = tpu.concatenate %71, %72 in 1 : vector<16x4xf32>, vector<16x4xf32> -> vector<16x8xf32>
    %74 = arith.mulf %68, %9 : vector<16x8xf32>
    %75 = arith.mulf %73, %11 : vector<16x8xf32>
    %76 = arith.addf %74, %75 : vector<16x8xf32>
    %77 = arith.truncf %76 : vector<16x8xf32> to vector<16x8xbf16>
    %cst_26 = arith.constant dense<0.000000e+00> : vector<16x16xf32>
    %78 = tpu.matmul %77, %35, %cst_26 {dimension_numbers = #tpu.dot_dimension_numbers<[1], [1], [0], [0], [0, 0, 1, 0], [], []>} : vector<16x8xbf16>, vector<16x8xbf16>, vector<16x16xf32> -> vector<16x16xf32>
    %cst_27 = arith.constant 0.353553385 : f32
    %79 = vector.broadcast %cst_27 : f32 to vector<16x16xf32>
    %80 = arith.mulf %78, %79 : vector<16x16xf32>
    %cst_28 = arith.constant 0xFF800000 : f32
    %81 = vector.broadcast %cst_28 : f32 to vector<16x16xf32>
    %82 = arith.select %39, %80, %81 : vector<16x16xi1>, vector<16x16xf32>
    %cst_29 = arith.constant dense<0xFF800000> : vector<16xf32>
    %83 = vector.multi_reduction <maximumf>, %82, %cst_29 [1] : vector<16x16xf32> to vector<16xf32>
    %84 = vector.shape_cast %83 : vector<16xf32> to vector<16x1xf32>
    %85 = vector.broadcast %84 : vector<16x1xf32> to vector<16x16xf32>
    %86 = arith.subf %82, %85 : vector<16x16xf32>
    %87 = math.exp %86 : vector<16x16xf32>
    %cst_30 = arith.constant dense<0.000000e+00> : vector<16xf32>
    %88 = vector.multi_reduction <add>, %87, %cst_30 [1] : vector<16x16xf32> to vector<16xf32>
    %89 = vector.shape_cast %88 : vector<16xf32> to vector<16x1xf32>
    %90 = arith.truncf %87 : vector<16x16xf32> to vector<16x16xbf16>
    %91 = vector.extract_strided_slice %7 {offsets = [0, 0], sizes = [16, 8], strides = [1, 1]} : vector<16x16xbf16> to vector<16x8xbf16>
    %cst_31 = arith.constant dense<0.000000e+00> : vector<16x8xf32>
    %92 = tpu.matmul %90, %91, %cst_31 {dimension_numbers = #tpu.dot_dimension_numbers<[1], [0], [0], [1], [0, 0, 1, 1], [], []>} : vector<16x16xbf16>, vector<16x8xbf16>, vector<16x8xf32> -> vector<16x8xf32>
    %93 = tpu.reciprocal %89 : vector<16x1xf32> -> vector<16x1xf32>
    %94 = vector.broadcast %93 : vector<16x1xf32> to vector<16x8xf32>
    %95 = arith.mulf %92, %94 : vector<16x8xf32>
    %96 = vector.extract_strided_slice %2 {offsets = [0, 16], sizes = [16, 8], strides = [1, 1]} : vector<16x32xf32> to vector<16x8xf32>
    %97 = vector.extract_strided_slice %96 {offsets = [0, 4], sizes = [16, 4], strides = [1, 1]} : vector<16x8xf32> to vector<16x4xf32>
    %cst_32 = arith.constant 0.000000e+00 : f32
    %98 = vector.broadcast %cst_32 : f32 to vector<16x4xf32>
    %99 = arith.subf %98, %97 : vector<16x4xf32>
    %100 = vector.extract_strided_slice %96 {offsets = [0, 0], sizes = [16, 4], strides = [1, 1]} : vector<16x8xf32> to vector<16x4xf32>
    %101 = tpu.concatenate %99, %100 in 1 : vector<16x4xf32>, vector<16x4xf32> -> vector<16x8xf32>
    %102 = arith.mulf %96, %9 : vector<16x8xf32>
    %103 = arith.mulf %101, %11 : vector<16x8xf32>
    %104 = arith.addf %102, %103 : vector<16x8xf32>
    %105 = arith.truncf %104 : vector<16x8xf32> to vector<16x8xbf16>
    %cst_33 = arith.constant dense<0.000000e+00> : vector<16x16xf32>
    %106 = tpu.matmul %105, %36, %cst_33 {dimension_numbers = #tpu.dot_dimension_numbers<[1], [1], [0], [0], [0, 0, 1, 0], [], []>} : vector<16x8xbf16>, vector<16x8xbf16>, vector<16x16xf32> -> vector<16x16xf32>
    %cst_34 = arith.constant 0.353553385 : f32
    %107 = vector.broadcast %cst_34 : f32 to vector<16x16xf32>
    %108 = arith.mulf %106, %107 : vector<16x16xf32>
    %cst_35 = arith.constant 0xFF800000 : f32
    %109 = vector.broadcast %cst_35 : f32 to vector<16x16xf32>
    %110 = arith.select %39, %108, %109 : vector<16x16xi1>, vector<16x16xf32>
    %cst_36 = arith.constant dense<0xFF800000> : vector<16xf32>
    %111 = vector.multi_reduction <maximumf>, %110, %cst_36 [1] : vector<16x16xf32> to vector<16xf32>
    %112 = vector.shape_cast %111 : vector<16xf32> to vector<16x1xf32>
    %113 = vector.broadcast %112 : vector<16x1xf32> to vector<16x16xf32>
    %114 = arith.subf %110, %113 : vector<16x16xf32>
    %115 = math.exp %114 : vector<16x16xf32>
    %cst_37 = arith.constant dense<0.000000e+00> : vector<16xf32>
    %116 = vector.multi_reduction <add>, %115, %cst_37 [1] : vector<16x16xf32> to vector<16xf32>
    %117 = vector.shape_cast %116 : vector<16xf32> to vector<16x1xf32>
    %118 = arith.truncf %115 : vector<16x16xf32> to vector<16x16xbf16>
    %119 = vector.extract_strided_slice %7 {offsets = [0, 8], sizes = [16, 8], strides = [1, 1]} : vector<16x16xbf16> to vector<16x8xbf16>
    %cst_38 = arith.constant dense<0.000000e+00> : vector<16x8xf32>
    %120 = tpu.matmul %118, %119, %cst_38 {dimension_numbers = #tpu.dot_dimension_numbers<[1], [0], [0], [1], [0, 0, 1, 1], [], []>} : vector<16x16xbf16>, vector<16x8xbf16>, vector<16x8xf32> -> vector<16x8xf32>
    %121 = tpu.reciprocal %117 : vector<16x1xf32> -> vector<16x1xf32>
    %122 = vector.broadcast %121 : vector<16x1xf32> to vector<16x8xf32>
    %123 = arith.mulf %120, %122 : vector<16x8xf32>
    %124 = vector.extract_strided_slice %2 {offsets = [0, 24], sizes = [16, 8], strides = [1, 1]} : vector<16x32xf32> to vector<16x8xf32>
    %125 = vector.extract_strided_slice %124 {offsets = [0, 4], sizes = [16, 4], strides = [1, 1]} : vector<16x8xf32> to vector<16x4xf32>
    %cst_39 = arith.constant 0.000000e+00 : f32
    %126 = vector.broadcast %cst_39 : f32 to vector<16x4xf32>
    %127 = arith.subf %126, %125 : vector<16x4xf32>
    %128 = vector.extract_strided_slice %124 {offsets = [0, 0], sizes = [16, 4], strides = [1, 1]} : vector<16x8xf32> to vector<16x4xf32>
    %129 = tpu.concatenate %127, %128 in 1 : vector<16x4xf32>, vector<16x4xf32> -> vector<16x8xf32>
    %130 = arith.mulf %124, %9 : vector<16x8xf32>
    %131 = arith.mulf %129, %11 : vector<16x8xf32>
    %132 = arith.addf %130, %131 : vector<16x8xf32>
    %133 = arith.truncf %132 : vector<16x8xf32> to vector<16x8xbf16>
    %cst_40 = arith.constant dense<0.000000e+00> : vector<16x16xf32>
    %134 = tpu.matmul %133, %36, %cst_40 {dimension_numbers = #tpu.dot_dimension_numbers<[1], [1], [0], [0], [0, 0, 1, 0], [], []>} : vector<16x8xbf16>, vector<16x8xbf16>, vector<16x16xf32> -> vector<16x16xf32>
    %cst_41 = arith.constant 0.353553385 : f32
    %135 = vector.broadcast %cst_41 : f32 to vector<16x16xf32>
    %136 = arith.mulf %134, %135 : vector<16x16xf32>
    %cst_42 = arith.constant 0xFF800000 : f32
    %137 = vector.broadcast %cst_42 : f32 to vector<16x16xf32>
    %138 = arith.select %39, %136, %137 : vector<16x16xi1>, vector<16x16xf32>
    %cst_43 = arith.constant dense<0xFF800000> : vector<16xf32>
    %139 = vector.multi_reduction <maximumf>, %138, %cst_43 [1] : vector<16x16xf32> to vector<16xf32>
    %140 = vector.shape_cast %139 : vector<16xf32> to vector<16x1xf32>
    %141 = vector.broadcast %140 : vector<16x1xf32> to vector<16x16xf32>
    %142 = arith.subf %138, %141 : vector<16x16xf32>
    %143 = math.exp %142 : vector<16x16xf32>
    %cst_44 = arith.constant dense<0.000000e+00> : vector<16xf32>
    %144 = vector.multi_reduction <add>, %143, %cst_44 [1] : vector<16x16xf32> to vector<16xf32>
    %145 = vector.shape_cast %144 : vector<16xf32> to vector<16x1xf32>
    %146 = arith.truncf %143 : vector<16x16xf32> to vector<16x16xbf16>
    %147 = vector.extract_strided_slice %7 {offsets = [0, 8], sizes = [16, 8], strides = [1, 1]} : vector<16x16xbf16> to vector<16x8xbf16>
    %cst_45 = arith.constant dense<0.000000e+00> : vector<16x8xf32>
    %148 = tpu.matmul %146, %147, %cst_45 {dimension_numbers = #tpu.dot_dimension_numbers<[1], [0], [0], [1], [0, 0, 1, 1], [], []>} : vector<16x16xbf16>, vector<16x8xbf16>, vector<16x8xf32> -> vector<16x8xf32>
    %149 = tpu.reciprocal %145 : vector<16x1xf32> -> vector<16x1xf32>
    %150 = vector.broadcast %149 : vector<16x1xf32> to vector<16x8xf32>
    %151 = arith.mulf %148, %150 : vector<16x8xf32>
    %152 = tpu.concatenate %67, %95, %123, %151 in 1 : vector<16x8xf32>, vector<16x8xf32>, vector<16x8xf32>, vector<16x8xf32> -> vector<16x32xf32>
    %153 = arith.truncf %152 : vector<16x32xf32> to vector<16x32xbf16>
    %c0_46 = arith.constant 0 : index
    %c0_47 = arith.constant 0 : index
    %c0_48 = arith.constant 0 : index
    %154 = vector.load %arg6[%c0_46, %c0_47, %c0_48] : memref<1x16x32xbf16, #tpu.memory_space<vmem>>, vector<1x16x32xbf16>
    %155 = vector.shape_cast %154 : vector<1x16x32xbf16> to vector<16x32xbf16>
    %156 = vector.shape_cast %153 : vector<16x32xbf16> to vector<1x16x32xbf16>
    tpu.vector_store %arg6[%c0_46, %c0_47, %c0_48], %156 {strides = array<i32>} : memref<1x16x32xbf16, #tpu.memory_space<vmem>>, vector<1x16x32xbf16>,
    return
  }
  func.func @transform_0(%arg0: i32) -> (i32, i32, i32) {
    %c0_i32 = arith.constant 0 : i32
    %c0_i32_0 = arith.constant 0 : i32
    %c0_i32_1 = arith.constant 0 : i32
    return %arg0, %c0_i32, %c0_i32_0 : i32, i32, i32
  }
  func.func @transform_1(%arg0: i32) -> (i32, i32, i32) {
    %c0_i32 = arith.constant 0 : i32
    %c0_i32_0 = arith.constant 0 : i32
    %c0_i32_1 = arith.constant 0 : i32
    return %arg0, %c0_i32, %c0_i32_0 : i32, i32, i32
  }
  func.func @transform_2(%arg0: i32) -> (i32, i32, i32) {
    %c0_i32 = arith.constant 0 : i32
    %c0_i32_0 = arith.constant 0 : i32
    %c0_i32_1 = arith.constant 0 : i32
    return %arg0, %c0_i32, %c0_i32_0 : i32, i32, i32
  }
  func.func @transform_3(%arg0: i32) -> (i32, i32, i32) {
    %c0_i32 = arith.constant 0 : i32
    %c0_i32_0 = arith.constant 0 : i32
    %c0_i32_1 = arith.constant 0 : i32
    return %arg0, %c0_i32, %c0_i32_0 : i32, i32, i32
  }
  func.func @transform_4(%arg0: i32) -> (i32, i32, i32) {
    %c0_i32 = arith.constant 0 : i32
    %c0_i32_0 = arith.constant 0 : i32
    %c0_i32_1 = arith.constant 0 : i32
    return %arg0, %c0_i32, %c0_i32_0 : i32, i32, i32
  }
  func.func @transform_5(%arg0: i32) -> (i32, i32, i32) {
    %c0_i32 = arith.constant 0 : i32
    %c0_i32_0 = arith.constant 0 : i32
    %c0_i32_1 = arith.constant 0 : i32
    return %arg0, %c0_i32, %c0_i32_0 : i32, i32, i32
  }
  func.func @transform_6(%arg0: i32) -> (i32, i32, i32) {
    %c0_i32 = arith.constant 0 : i32
    %c0_i32_0 = arith.constant 0 : i32
    %c0_i32_1 = arith.constant 0 : i32
    return %arg0, %c0_i32, %c0_i32_0 : i32, i32, i32
  }
}

module attributes {stable_mosaic.version = 11 : i64} {
  func.func @_matmul_kernel(%arg0: i32, %arg1: memref<32x32xbf16, #tpu.memory_space<vmem>>, %arg2: memref<32x32xbf16, #tpu.memory_space<vmem>>, %arg3: memref<32x32xbf16, #tpu.memory_space<vmem>>) attributes {dimension_semantics = [#tpu.dimension_semantics<arbitrary>], iteration_bounds = array<i64: 1>, scalar_prefetch = 0 : i64, scratch_operands = 0 : i64, tpu.core_type = #tpu.core_type<tc>, window_params = [{pipeline_mode = #tpu.pipeline_mode<synchronous>, transform_indices = @transform_0, window_bounds = array<i64: 32, 32>}, {pipeline_mode = #tpu.pipeline_mode<synchronous>, transform_indices = @transform_1, window_bounds = array<i64: 32, 32>}, {pipeline_mode = #tpu.pipeline_mode<synchronous>, transform_indices = @transform_2, window_bounds = array<i64: 32, 32>}]} {
    %c0 = arith.constant 0 : index
    %c0_0 = arith.constant 0 : index
    %0 = vector.load %arg1[%c0, %c0_0] : memref<32x32xbf16, #tpu.memory_space<vmem>>, vector<32x32xbf16>
    %c0_1 = arith.constant 0 : index
    %c0_2 = arith.constant 0 : index
    %1 = vector.load %arg2[%c0_1, %c0_2] : memref<32x32xbf16, #tpu.memory_space<vmem>>, vector<32x32xbf16>
    %cst = arith.constant dense<0.000000e+00> : vector<32x32xf32>
    %2 = tpu.matmul %0, %1, %cst {dimension_numbers = #tpu.dot_dimension_numbers<[1], [0], [0], [1], [0, 0, 1, 1], [], []>} : vector<32x32xbf16>, vector<32x32xbf16>, vector<32x32xf32> -> vector<32x32xf32>
    %3 = arith.truncf %2 : vector<32x32xf32> to vector<32x32xbf16>
    %c0_3 = arith.constant 0 : index
    %c0_4 = arith.constant 0 : index
    %4 = vector.load %arg3[%c0_3, %c0_4] : memref<32x32xbf16, #tpu.memory_space<vmem>>, vector<32x32xbf16>
    tpu.vector_store %arg3[%c0_3, %c0_4], %3 {strides = array<i32>} : memref<32x32xbf16, #tpu.memory_space<vmem>>, vector<32x32xbf16>,
    return
  }
  func.func @transform_0(%arg0: i32) -> (i32, i32) {
    %c0_i32 = arith.constant 0 : i32
    %c0_i32_0 = arith.constant 0 : i32
    %c0_i32_1 = arith.constant 0 : i32
    return %c0_i32, %c0_i32_0 : i32, i32
  }
  func.func @transform_1(%arg0: i32) -> (i32, i32) {
    %c0_i32 = arith.constant 0 : i32
    %c0_i32_0 = arith.constant 0 : i32
    %c0_i32_1 = arith.constant 0 : i32
    return %c0_i32, %c0_i32_0 : i32, i32
  }
  func.func @transform_2(%arg0: i32) -> (i32, i32) {
    %c0_i32 = arith.constant 0 : i32
    %c0_i32_0 = arith.constant 0 : i32
    %c0_i32_1 = arith.constant 0 : i32
    return %c0_i32, %c0_i32_0 : i32, i32
  }
}

</mosaic_0001>

<bundles_post_ra>
// kernel: flash_attention2_forward.3
= control target key start
LH: loop header
LB: loop body
LE: loop exit
PB: predicated region body
PF: predicated region fallthrough
CT: control target
= control target key end

     0   :  { %7 = vsyncpa [#allocation3], 0  ;;  %s195_s9 = smov [#allocation2]   ;;  %s243_s0 = inlined_call_operand.hbm [shape: bf16[32,32], index: 0, kind: input, shape index: {}]   ;;  %s244_s1 = inlined_call_operand.vmem [shape: bf16[32,64], index: 1, kind: input, shape index: {}]   ;;  %s245_s2 = inlined_call_operand.vmem [shape: bf16[32,64], index: 2, kind: output, shape index: {}]  }
   0x1   :  { %s13_s10 = sshll.u32 %s195_s9, 4  ;;  %s171_s13 = scalar_lea.hbm %s243_s0, 256  ;;  %s14_s10 = int_to_ptr.vmem [resolvable:$true] %s13_s10 }
   0x2   :  { %p172_p0 = scmp.ne.s32.totalorder %s243_s0, %s171_s13  ;;  %p175_p1 = scmp.lt.u32.totalorder %s171_s13, %s243_s0 }
   0x4   :  { %p177_p2 = pnand %p175_p1, %p172_p0 }
   0x6   :  { %180 = shalt.err (!%p177_p2)
}
   0x7   :  { %s181_s18 = scalar_lea.vmem %s14_s10, 256  ;;  %p186_p4 = scmp.lt.s32.totalorder %s14_s10, %s14_s10 }
   0x8   :  { %p182_p3 = scmp.ne.s32.totalorder %s14_s10, %s181_s18  ;;  %p187_p5 = scmp.lt.s32.totalorder %s181_s18, %s181_s18 }
   0xa   :  { %p188_p6 = por %p187_p5, %p186_p4 }
   0xc   :  { %p189_p7 = pnand %p188_p6, %p182_p3 }
   0xe   :  { %192 = shalt.err (!%p189_p7)
}
   0xf   :  { %s196_s19 = smov 64   ;;  %s197_s20 = smov 4  }
  0x10   :  { %19 = dma.hbm_to_vmem [thread:$0]  %s243_s0, 256, %s14_s10, [#allocation3], %s196_s19, %s196_s19, %s197_s20  }
  0x11   :  { %193 = dma.done.wait [#allocation3], 256  }
  0x12   :  { %194 = vsyncadd [#allocation3], 4294967040  ;;  %v167_v0 = vld [vmem:[%s244_s1] sm:$0xff]   ;;  %v168_v1 = vld [vmem:[%s244_s1 + $0x8] sm:$0xff]   ;;  %vm56_vm0 = vcmask 261120   ;;  %vm128_vm1 = vcmask 519168  }
  0x13   :  { %156 = vmatprep.subr.bf16.mxu0 %v167_v0  ;;  %v169_v2 = vld [vmem:[#allocation2] sm:$0xff]   ;;  %v170_v3 = vld [vmem:[#allocation2 + $0x8] sm:$0xff]  }
  0x14   :  { %157 = vmatpush3.bf16.msra.mxu0 %v167_v0  ;;  %160 = vmatprep.mubr.msk.bf16.mxu0 %vm56_vm0, %v169_v2 }
  0x15   :  { %158 = vmatprep.subr.bf16.mxu0 %v168_v1 }
  0x18   :  { %159 = vmatpush3.bf16.msra.mxu0 %v168_v1 }
  0x1b   :  { %161 = vmatmul.mubr.msk.bf16.vlgmr.msra.gmra.mrb[0].mxu0 %vm56_vm0, %v170_v3 }
  0xee   :  { %v162_v4 = vpop.f32.mrb[0].mxu0 }
  0xef   :  { %v150_v5 = vpack.c.bf16 %v162_v4, %v162_v4  ;;  %v97_v6 = vpop.f32.mrb[1].mxu0 }
  0xf0   :  { %v148_v7 = vpack.c.bf16 %v97_v6, %v97_v6  ;;  %v163_v8 = vpop.f32.mrb[2].mxu0 }
  0xf1   :  { %131 = vst.msk [vmem:[%s245_s2 + $0x8] sm:$0xf] %vm128_vm1, %v150_v5  ;;  %v151_v9 = vpack.c.bf16 %v163_v8, %v163_v8  ;;  %v100_v10 = vpop.f32.mrb[3].mxu0 }
  0xf2   :  { %129 = vst.msk [vmem:[%s245_s2] sm:$0xf] %vm128_vm1, %v148_v7  ;;  %v149_v11 = vpack.c.bf16 %v100_v10, %v100_v10 }
  0xf3   :  { %132 = vst.msk [vmem:[%s245_s2 + $0xc] sm:$0xf] %vm128_vm1, %v151_v9 }
  0xf4   :  { %130 = vst.msk [vmem:[%s245_s2 + $0x4] sm:$0xf] %vm128_vm1, %v149_v11 }
  0xf5   :  { %137 = vsyncpa [#allocation3], 1 }

// kernel: flash_attention2_forward.5
= control target key start
LH: loop header
LB: loop body
LE: loop exit
PB: predicated region body
PF: predicated region fallthrough
CT: control target
= control target key end

     0   :  { %vm43_vm0 = vcmask 261120   ;;  %s235_s0 = inlined_call_operand.vmem [shape: bf16[32,32], index: 0, kind: input, shape index: {}]   ;;  %s236_s1 = inlined_call_operand.vmem [shape: bf16[32,32], index: 1, kind: input, shape index: {}]   ;;  %s237_s2 = inlined_call_operand.hbm [shape: bf16[32,32], index: 2, kind: output, shape index: {}]  }
   0x1   :  { %v165_v0 = vld [vmem:[%s236_s1] sm:$0xff]   ;;  %v166_v1 = vld [vmem:[%s236_s1 + $0x8] sm:$0xff]  }
   0x2   :  { %154 = vmatprep.subr.bf16.mxu0 %v165_v0  ;;  %v167_v2 = vld [vmem:[%s235_s0] sm:$0xff]  }
   0x3   :  { %155 = vmatpush3.bf16.msra.mxu0 %v165_v0  ;;  %158 = vmatprep.mubr.msk.bf16.mxu0 %vm43_vm0, %v167_v2 }
   0x4   :  { %156 = vmatprep.subr.bf16.mxu0 %v166_v1 }
   0x5   :  { %7 = vsyncpa [#allocation3], 0  ;;  %v168_v3 = vld [vmem:[%s235_s0 + $0x8] sm:$0xff]   ;;  %vm115_vm1 = vcmask 257024   ;;  %s193_s17 = smov [#allocation2]  }
   0x6   :  { %s125_s1 = sshll.u32 %s193_s17, 4  ;;  %s126_s1 = int_to_ptr.vmem [resolvable:$true] %s125_s1 }
   0x7   :  { %157 = vmatpush3.bf16.msra.mxu0 %v166_v1  ;;  %s169_s18 = scalar_lea.vmem %s126_s1, 256  ;;  %p174_p1 = scmp.lt.s32.totalorder %s126_s1, %s126_s1 }
   0x8   :  { %p170_p0 = scmp.ne.s32.totalorder %s126_s1, %s169_s18  ;;  %p175_p2 = scmp.lt.s32.totalorder %s169_s18, %s169_s18 }
   0xa   :  { %159 = vmatmul.mubr.msk.bf16.vlgmr.msra.gmra.mrb[0].mxu0 %vm43_vm0, %v168_v3  ;;  %p176_p3 = por %p175_p2, %p174_p1 }
   0xc   :  { %p177_p4 = pnand %p176_p3, %p170_p0 }
  0xdd   :  { %v160_v4 = vpop.f32.mrb[0].mxu0 }
  0xde   :  { %v148_v5 = vpack.c.bf16 %v160_v4, %v160_v4  ;;  %v84_v6 = vpop.f32.mrb[1].mxu0 }
  0xdf   :  { %v146_v7 = vpack.c.bf16 %v84_v6, %v84_v6  ;;  %v161_v8 = vpop.f32.mrb[2].mxu0 }
  0xe0   :  { %118 = vst.msk [vmem:[#allocation2 + $0x8] sm:$0xf] %vm115_vm1, %v148_v5  ;;  %v149_v9 = vpack.c.bf16 %v161_v8, %v161_v8  ;;  %v87_v10 = vpop.f32.mrb[3].mxu0 }
  0xe1   :  { %116 = vst.msk [vmem:[#allocation2] sm:$0xf] %vm115_vm1, %v146_v7  ;;  %v147_v11 = vpack.c.bf16 %v87_v10, %v87_v10 }
  0xe2   :  { %119 = vst.msk [vmem:[#allocation2 + $0xc] sm:$0xf] %vm115_vm1, %v149_v9 }
  0xe3   :  { %117 = vst.msk [vmem:[#allocation2 + $0x4] sm:$0xf] %vm115_vm1, %v147_v11 }
  0xe4   :  { %180 = shalt.err (!%p177_p4)
}
  0xe5   :  { %s181_s20 = scalar_lea.hbm %s237_s2, 256 }
  0xe6   :  { %p182_p5 = scmp.ne.s32.totalorder %s237_s2, %s181_s20  ;;  %p185_p6 = scmp.lt.u32.totalorder %s181_s20, %s237_s2 }
  0xe8   :  { %p187_p7 = pnand %p185_p6, %p182_p5 }
  0xea   :  { %190 = shalt.err (!%p187_p7)
}
  0xeb   :  { %s194_s25 = smov 64   ;;  %s195_s26 = smov 4  }
  0xec   :  { %131 = dma.vmem_to_hbm [thread:$0]  %s126_s1, 256, %s237_s2, [#allocation3], %s194_s25, %s194_s25, %s195_s26  }
  0xed   :  { %191 = dma.done.wait [#allocation3], 256  }
  0xee   :  { %192 = vsyncadd [#allocation3], 4294967040 }
  0xef   :  { %135 = vsyncpa [#allocation3], 1 }

// kernel: flash_attention2_forward.4
= control target key start
LH: loop header
LB: loop body
LE: loop exit
PB: predicated region body
PF: predicated region fallthrough
CT: control target
= control target key end

     0   :  { %s1510_s21 = smov 0   ;;  %s1751_s0 = inlined_call_operand.vmem [shape: bf16[2,16,32], index: 0, kind: input, shape index: {}]   ;;  %s1752_s1 = inlined_call_operand.vmem [shape: bf16[2,16,16], index: 1, kind: input, shape index: {}]   ;;  %s1753_s2 = inlined_call_operand.vmem [shape: bf16[2,16,16], index: 2, kind: input, shape index: {}]   ;;  %s1754_s3 = inlined_call_operand.vmem [shape: f32[2,16,8], index: 3, kind: input, shape index: {}]   ;;  %s1755_s4 = inlined_call_operand.vmem [shape: f32[2,16,8], index: 4, kind: input, shape index: {}]   ;;  %s1756_s5 = inlined_call_operand.vmem [shape: bf16[2,16,32], index: 5, kind: output, shape index: {0}]   ;;  %s1757_s6 = inlined_call_operand.vmem [shape: bf16[2,16,16], index: 6, kind: output, shape index: {1}]  }
   0x1 LB: > { %s1238_s22 = sadd.s32 4294967295, %s1460_s21   ;;  %p1242_p0 = scmp.ge.s32.totalorder %s1460_s21, 1  ;;  %s1460_s21 = sphi %s1510_s21, %s17_s21  }
   0x2   : > { %p255_p1 = scmp.lt.s32.totalorder %s1460_s21, 3 }
   0x4   : > { %p256_p2 = pnand %p1242_p0, %p255_p1 }
   0x5   : > { %p310_p3 = scmp.lt.s32.totalorder (!%p256_p2), %s1238_s22, 1  ;;  %v1462_v7 = vmov (!%p256_p2), 0.0   ;;  %s1463_s30 = smov (!%p256_p2), 4   ;;  %vm1465_vm0 = vmmov (!%p256_p2), 0   ;;  %vm378_vm1 = vcmask (!%p256_p2), 31744   ;;  %vm423_vm2 = vcmask (!%p256_p2), 64512  }
   0x6   : > { %259 = sbr.rel (%p256_p2) target bundleno = 1274 (0x4fa), region = 40  ;;  %1307 = vmatprep.subr.bf16.mxu0 (!%p256_p2), %v1462_v7  ;;  %1313 = vmatprep.subr.bf16.mxu1 (!%p256_p2), %v1462_v7  ;;  %s1464_s7 = smov (!%p256_p2), 124   ;;  %vm434_vm3 = vcmask (!%p256_p2), 125952   ;;  %vm524_vm5 = vcmask (!%p256_p2), 130048   ;;  %vm1088_vm7 = vcmask (!%p256_p2), 195584   ;;  %vm1099_vm8 = vcmask (!%p256_p2), 257024  }
   0x7   : > { %1309 = vmatprep.mubr.msk.bf16.mxu0 (!%p256_p2), %vm1465_vm0, %v1462_v7  ;;  %1315 = vmatprep.mubr.msk.bf16.mxu1 (!%p256_p2), %vm1465_vm0, %v1462_v7  ;;  %s1466_s8 = smov (!%p256_p2), 116   ;;  %s1467_s9 = smov (!%p256_p2), 108  }
   0x8   : > { %s1468_s10 = smov (!%p256_p2), 100   ;;  %s1469_s15 = smov (!%p256_p2), 8  }
   0x9   : > { %s1470_s16 = smov (!%p256_p2), 16   ;;  %s1471_s17 = smov (!%p256_p2), 24  }
   0xd   : > { %s1759_s22 = smov (!%p310_p3, %s1238_s22), 1 }
   0xe   : > { %s1521_s23 = sshll.u32 %s1759_s22, 3  ;;  %s1275_s11 = sshll.u32 %s1759_s22, 4 }
   0xf   : > { %s319_s26 = scalar_lea.vmem %s1752_s1, %s1521_s23  ;;  %s314_s29 = scalar_lea.vmem %s1751_s0, %s1521_s23 }
  0x10   : > { %v1288_v0 = vld [vmem:[%s319_s26] sm:$0xff]   ;;  %s329_s14 = scalar_lea.vmem %s1754_s3, %s1275_s11  ;;  %s334_s20 = scalar_lea.vmem %s1755_s4, %s1275_s11 }
  0x11   : > { %v1284_v1 = vld [vmem:[%s314_s29] sm:$0xff]   ;;  %v1531_v2 = vunpack.c.l.bf16 %v1288_v0  ;;  %v1533_v3 = vunpack.c.h.bf16 %v1288_v0  ;;  %v357_v14 = vld [vmem:[%s329_s14 + $0x8] sm:$0xff]  ;;  %s344_s25 = scalar_lea.vmem %s1757_s6, %s1521_s23  ;;  %s1472_s26 = smov 120  }
  0x12   : > { %v1535_v4 = vunpack.c.l.bf16 %v1284_v1  ;;  %v1542_v8 = vunpack.c.h.bf16 %v1284_v1  ;;  %v356_v13 = vld [vmem:[%s329_s14] sm:$0xff]  ;;  %v1570_v22 = vld [vmem:[%s334_s20 + $0x8] sm:$0xff]  ;;  %s324_s29 = scalar_lea.vmem %s1753_s2, %s1521_s23 }
  0x13   : > { %v1376_v5 = vpack.i.bf16 %v1533_v3, %v1531_v2  ;;  %v360_v6 = vsub.f32 0.0, %v1531_v2  ;;  %v361_v9 = vsub.f32 0.0, %v1533_v3  ;;  %v1566_v19 = vld [vmem:[%s334_s20] sm:$0xff]  ;;  %v381_v20 = vmul.f32 %v1531_v2, %v356_v13 }
  0x14   : > { %v446_v10 = vsub.f32 0.0, %v1535_v4  ;;  %v447_v11 = vsub.f32 0.0, %v1542_v8  ;;  %v1381_v12 = vpack.i.bf16 %v1542_v8, %v1535_v4  ;;  %v382_v26 = vmul.f32 %v1533_v3, %v357_v14 }
  0x15   : > { %1377 = vrot.lane.b32.xlu1 %v1376_v5, %s1463_s30  ;;  %364 = vrot.lane.b32.xlu0 %v360_v6, %s1464_s7  ;;  %v466_v36 = vmul.f32 %v1535_v4, %v356_v13  ;;  %v467_v37 = vmul.f32 %v1542_v8, %v357_v14 }
  0x19   : > { %366 = vrot.lane.b32.xlu0 %v361_v9, %s1464_s7  ;;  %450 = vrot.lane.b32.xlu1 %v446_v10, %s1464_s7 }
  0x1d   : > { %452 = vrot.lane.b32.xlu0 %v447_v11, %s1464_s7  ;;  %1382 = vrot.lane.b32.xlu1 %v1381_v12, %s1463_s30  ;;  %s1473_s30 = smov 104  }
  0x21   : > { %387 = vrot.lane.b32.xlu0 %v360_v6, %s1466_s8  ;;  %389 = vrot.lane.b32.xlu1 %v361_v9, %s1466_s8 }
  0x25   : > { %1387 = vrot.lane.b32.xlu0 %v1376_v5, %s1464_s7  ;;  %598 = vrot.lane.b32.xlu1 %v446_v10, %s1466_s8 }
  0x29   : > { %600 = vrot.lane.b32.xlu0 %v447_v11, %s1466_s8  ;;  %1392 = vrot.lane.b32.xlu1 %v1381_v12, %s1464_s7  ;;  %s1474_s7 = smov 112  }
  0x2d   : > { %745 = vrot.lane.b32.xlu0 %v446_v10, %s1467_s9  ;;  %747 = vrot.lane.b32.xlu1 %v447_v11, %s1467_s9 }
  0x31   : > { %1397 = vrot.lane.b32.xlu0 %v1381_v12, %s1466_s8  ;;  %907 = vrot.lane.b32.xlu1 %v446_v10, %s1468_s10 }
  0x35   : > { %909 = vrot.lane.b32.xlu0 %v447_v11, %s1468_s10  ;;  %1402 = vrot.lane.b32.xlu1 %v1381_v12, %s1467_s9  ;;  %s339_s10 = scalar_lea.vmem %s1756_s5, %s1521_s23 }
  0x39   : > { %403 = vrot.lane.b32.xlu0 %v356_v13, %s1469_s15  ;;  %405 = vrot.lane.b32.xlu1 %v357_v14, %s1469_s15 }
  0x3d   : > { %759 = vrot.lane.b32.xlu0 %v356_v13, %s1470_s16  ;;  %761 = vrot.lane.b32.xlu1 %v357_v14, %s1470_s16 }
  0x41   : > { %921 = vrot.lane.b32.xlu0 %v356_v13, %s1471_s17  ;;  %923 = vrot.lane.b32.xlu1 %v357_v14, %s1471_s17 }
  0x87   : > { %v1378_v15 = vpop.permute.xlu1 %1377  ;;  %v365_v16 = vpop.permute.xlu0 %364 }
  0x88   : > { %v1380_v17 = vunpack.i.h.bf16 %v1378_v15  ;;  %v1379_v18 = vunpack.i.l.bf16 %v1378_v15 }
  0x8a   : > { %v379_v21 = vsel %vm378_vm1, %v365_v16, %v1379_v18 }
  0x8b   : > { %v383_v23 = vmul.f32 %v379_v21, %v1566_v19  ;;  %v367_v24 = vpop.permute.xlu0 %366  ;;  %v451_v25 = vpop.permute.xlu1 %450 }
  0x8c   : > { %v380_v27 = vsel %vm378_vm1, %v367_v24, %v1380_v17 }
  0x8d   : > { %v384_v28 = vmul.f32 %v380_v27, %v1570_v22  ;;  %v1576_v29 = vadd.f32 %v383_v23, %v381_v20 }
  0x8f   : > { %v453_v30 = vpop.permute.xlu0 %452  ;;  %v1383_v31 = vpop.permute.xlu1 %1382  ;;  %v1578_v32 = vadd.f32 %v384_v28, %v382_v26 }
  0x90   : > { %v1385_v33 = vunpack.i.h.bf16 %v1383_v31  ;;  %v1384_v34 = vunpack.i.l.bf16 %v1383_v31 }
  0x91   : > { %v437_v35 = vpack.c.bf16 %v1578_v32, %v1576_v29 }
  0x92   : > { %v465_v38 = vsel %vm378_vm1, %v453_v30, %v1385_v33  ;;  %v464_v39 = vsel %vm378_vm1, %v451_v25, %v1384_v34 }
  0x93   : > { %v469_v40 = vmul.f32 %v465_v38, %v1570_v22  ;;  %v468_v41 = vmul.f32 %v464_v39, %v1566_v19  ;;  %v388_v42 = vpop.permute.xlu0 %387  ;;  %v1589_v43 = vsel %vm423_vm2, %v437_v35, 0  ;;  %v390_v44 = vpop.permute.xlu1 %389 }
  0x94   : > { %1308 = vmatpush3.bf16.xpose.msra.mxu0 %v1589_v43 }
  0x95   : > { %v470_v45 = vadd.f32 %v468_v41, %v466_v36  ;;  %v471_v46 = vadd.f32 %v469_v40, %v467_v37  ;;  %1325 = vmatprep.subr.bf16.mxu0 %v1462_v7 }
  0x97   : > { %v1388_v47 = vpop.permute.xlu0 %1387  ;;  %v472_v48 = vpack.c.bf16 %v471_v46, %v470_v45  ;;  %v599_v49 = vpop.permute.xlu1 %598 }
  0x98   : > { %v1390_v50 = vunpack.i.h.bf16 %v1388_v47  ;;  %v1389_v51 = vunpack.i.l.bf16 %v1388_v47 }
  0x9a   : > { %v400_v52 = vsel %vm378_vm1, %v390_v44, %v1390_v50  ;;  %v399_v53 = vsel %vm378_vm1, %v388_v42, %v1389_v51 }
  0x9b   : > { %v412_v54 = vmul.f32 %v400_v52, %v1570_v22  ;;  %1310 = vmatmul.mubr.msk.bf16.vlgmr.msra.gmra.mrb[0].mxu0 %vm423_vm2, %v472_v48  ;;  %v411_v55 = vmul.f32 %v399_v53, %v1566_v19  ;;  %v601_v56 = vpop.permute.xlu0 %600  ;;  %v1393_v57 = vpop.permute.xlu1 %1392 }
  0x9c   : > { %v1395_v58 = vunpack.i.h.bf16 %v1393_v57  ;;  %v1394_v59 = vunpack.i.l.bf16 %v1393_v57  ;;  %1327 = vmatprep.mubr.msk.bf16.mxu0 %vm1465_vm0, %v1462_v7 }
  0x9d   : > { %415 = vrot.lane.b32.xlu0 %v411_v55, %s1469_s15  ;;  %417 = vrot.lane.b32.xlu1 %v412_v54, %s1469_s15 }
  0x9e   : > { %v611_v60 = vsel %vm378_vm1, %v601_v56, %v1395_v58  ;;  %v610_v61 = vsel %vm378_vm1, %v599_v49, %v1394_v59 }
  0x9f   : > { %v746_v62 = vpop.permute.xlu0 %745  ;;  %v748_v63 = vpop.permute.xlu1 %747  ;;  %v615_v0 = vmul.f32 %v611_v60, %v1570_v22  ;;  %v614_v1 = vmul.f32 %v610_v61, %v1566_v19 }
  0xa1   : > { %620 = vrot.lane.b32.xlu1 %v615_v0, %s1469_s15  ;;  %618 = vrot.lane.b32.xlu0 %v614_v1, %s1469_s15 }
  0xa3   : > { %v1398_v5 = vpop.permute.xlu0 %1397  ;;  %v908_v6 = vpop.permute.xlu1 %907 }
  0xa4   : > { %v1400_v9 = vunpack.i.h.bf16 %v1398_v5  ;;  %v1399_v10 = vunpack.i.l.bf16 %v1398_v5 }
  0xa6   : > { %v758_v11 = vsel %vm378_vm1, %v748_v63, %v1400_v9  ;;  %v757_v12 = vsel %vm378_vm1, %v746_v62, %v1399_v10 }
  0xa7   : > { %v1403_v13 = vpop.permute.xlu1 %1402  ;;  %v768_v14 = vmul.f32 %v758_v11, %v1570_v22  ;;  %v767_v15 = vmul.f32 %v757_v12, %v1566_v19  ;;  %v910_v18 = vpop.permute.xlu0 %909 }
  0xa8   : > { %v1405_v16 = vunpack.i.h.bf16 %v1403_v13  ;;  %v1404_v17 = vunpack.i.l.bf16 %v1403_v13 }
  0xa9   : > { %773 = vrot.lane.b32.xlu1 %v768_v14, %s1470_s16  ;;  %771 = vrot.lane.b32.xlu0 %v767_v15, %s1470_s16  ;;  %v1660_v15 = vld [vmem:[%s324_s29] sm:$0xff]  }
  0xaa   : > { %v920_v20 = vsel %vm378_vm1, %v910_v18, %v1405_v16  ;;  %v919_v21 = vsel %vm378_vm1, %v908_v6, %v1404_v17  ;;  %1314 = vmatpush3.bf16.msra.mxu1 %v1660_v15  ;;  %1326 = vmatpush3.bf16.msra.mxu0 %v1660_v15 }
  0xab   : > { %v930_v23 = vmul.f32 %v920_v20, %v1570_v22  ;;  %v929_v24 = vmul.f32 %v919_v21, %v1566_v19  ;;  %v404_v25 = vpop.permute.xlu0 %403  ;;  %v406_v26 = vpop.permute.xlu1 %405  ;;  %1319 = vmatprep.subr.bf16.mxu1 %v1462_v7  ;;  %1337 = vmatprep.subr.bf16.mxu0 %v1462_v7 }
  0xac   : > { %v409_v33 = vmul.f32 %v1531_v2, %v404_v25  ;;  %v410_v34 = vmul.f32 %v1533_v3, %v406_v26  ;;  %v612_v22 = vmul.f32 %v1535_v4, %v404_v25  ;;  %v613_v19 = vmul.f32 %v1542_v8, %v406_v26 }
  0xad   : > { %935 = vrot.lane.b32.xlu1 %v930_v23, %s1471_s17  ;;  %933 = vrot.lane.b32.xlu0 %v929_v24, %s1471_s17 }
  0xaf   : > { %v760_v27 = vpop.permute.xlu0 %759  ;;  %v762_v28 = vpop.permute.xlu1 %761 }
  0xb0   : > { %v765_v48 = vmul.f32 %v1535_v4, %v760_v27  ;;  %v766_v49 = vmul.f32 %v1542_v8, %v762_v28 }
  0xb3   : > { %v922_v30 = vpop.permute.xlu0 %921  ;;  %v924_v31 = vpop.permute.xlu1 %923 }
  0xb4   : > { %v927_v6 = vmul.f32 %v1535_v4, %v922_v30  ;;  %v928_v9 = vmul.f32 %v1542_v8, %v924_v31 }
 0x10f   : > { %v416_v35 = vpop.permute.xlu0 %415  ;;  %v418_v36 = vpop.permute.xlu1 %417 }
 0x110   : > { %v421_v37 = vadd.f32 %v416_v35, %v409_v33  ;;  %v422_v38 = vadd.f32 %v418_v36, %v410_v34 }
 0x112   : > { %v424_v39 = vsel %vm423_vm2, %v1576_v29, %v421_v37  ;;  %v425_v2 = vsel %vm423_vm2, %v1578_v32, %v422_v38  ;;  %v438_v3 = vpack.c.bf16 %v422_v38, %v421_v37  ;;  %v439_v32 = vlaneseq }
 0x113   : > { %v1279_v40 = vpack.c.bf16 %v424_v39, %v424_v39  ;;  %v1280_v41 = vpack.c.bf16 %v425_v2, %v425_v2  ;;  %v621_v42 = vpop.permute.xlu1 %620  ;;  %v619_v44 = vpop.permute.xlu0 %618 }
 0x114   : > { %v625_v45 = vadd.f32 %v621_v42, %v613_v19  ;;  %v624_v46 = vadd.f32 %v619_v44, %v612_v22  ;;  %v1634_v54 = vshrl.u32 %v439_v32, 7  ;;  %v1636_v55 = vand.u32 127, %v439_v32 }
 0x115   : > { %435 = vst.msk [vmem:[%s344_s25] sm:$0xf] %vm434_vm3, %v1279_v40  ;;  %436 = vst.msk [vmem:[%s344_s25 + $0x4] sm:$0xf] %vm434_vm3, %v1280_v41 }
 0x116   : > { %v626_v47 = vpack.c.bf16 %v625_v45, %v624_v46  ;;  %v1639_v56 = vadd.s32 8, %v1634_v54  ;;  %vm444_vm4 = vcmp.ge.s32.totalorder %v1634_v54, %v1636_v55 }
 0x118   : > { %vm445_vm6 = vcmp.ge.s32.totalorder %v1639_v56, %v1636_v55 }
 0x11b   : > { %v774_v50 = vpop.permute.xlu1 %773  ;;  %v772_v51 = vpop.permute.xlu0 %771 }
 0x11c   : > { %v778_v29 = vadd.f32 %v774_v50, %v766_v49  ;;  %v777_v52 = vadd.f32 %v772_v51, %v765_v48 }
 0x11e   : > { %v779_v53 = vpack.c.bf16 %v778_v29, %v777_v52 }
 0x11f   : > { %v936_v10 = vpop.permute.xlu1 %935  ;;  %v934_v11 = vpop.permute.xlu0 %933 }
 0x120   : > { %v940_v12 = vadd.f32 %v936_v10, %v928_v9  ;;  %v939_v13 = vadd.f32 %v934_v11, %v927_v6 }
 0x122   : > { %v941_v14 = vpack.c.bf16 %v940_v12, %v939_v13 }
 0x16e   : > { %v513_v57 = vpop.f32.mrb[0].mxu0 }
 0x16f   : > { %v520_v58 = vmul.f32 0.35355338, %v513_v57  ;;  %v1311_v59 = vpop.f32.mrb[1].mxu0 }
 0x170   : > { %v516_v60 = vpop.f32.mrb[2].mxu0 }
 0x171   : > { %v521_v61 = vmul.f32 0.35355338, %v516_v60  ;;  %v1312_v62 = vpop.f32.mrb[3].mxu0  ;;  %v522_v63 = vsel %vm444_vm4, %v520_v58, -inf }
 0x172   : > { %v525_v0 = vsel %vm524_vm5, %v522_v63, -inf }
 0x173   : > { %526 = vmax.xlane.f32.xlu0 %v525_v0  ;;  %v523_v1 = vsel %vm445_vm6, %v521_v61, -inf }
 0x174   : > { %v528_v5 = vsel %vm524_vm5, %v523_v1, -inf }
 0x175   : > { %529 = vmax.xlane.f32.xlu1 %v528_v5 }
 0x186   : > { %784 = vrot.lane.b32.xlu1 %v438_v3, %s1472_s26 }
 0x189   : > { %628 = vrot.lane.b32.xlu0 %v626_v47, %s1472_s26 }
 0x18a   : > { %943 = vrot.lane.b32.xlu1 %v941_v14, %s1473_s30 }
 0x18d   : > { %781 = vrot.lane.b32.xlu0 %v779_v53, %s1474_s7 }
 0x200   : > { %v527_v4 = vpop.xlane.xlu0 %526 }
 0x201   : > { %v531_v8 = vsub.f32 %v522_v63, %v527_v4 }
 0x202   : > { %v530_v16 = vpop.xlane.xlu1 %529 }
 0x203   : > { %v533_v17 = vmul.f32 1.442695, %v531_v8  ;;  %v532_v18 = vsub.f32 %v523_v1, %v530_v16 }
 0x204   : > { %v629_v26 = vpop.permute.xlu0 %628 }
 0x205   : > { %v535_v20 = vmul.f32 1.442695, %v532_v18  ;;  %1422 = vpow2.f32 %v533_v17 }
 0x206   : > { %v785_v25 = vpop.permute.xlu1 %784 }
 0x207   : > { %1424 = vpow2.f32 %v535_v20  ;;  %v790_v27 = vsel %vm423_vm2, %v785_v25, 0 }
 0x208   : > { %v782_v28 = vpop.permute.xlu0 %781 }
 0x20f   : > { %v1667_v21 = vpop.eup %1422 }
 0x211   : > { %v1669_v23 = vpop.eup %1424 }
 0x212   : > { %v543_v24 = vpack.c.bf16 %v1669_v23, %v1667_v21 }
 0x214   : > { %1316 = vmatmul.mubr.msk.bf16.vlgmr.msra.gmra.mrb[0].mxu1 %vm524_vm5, %v543_v24 }
 0x215   : > { %1320 = vmatpush3.bf16.xpose.msra.mxu1 %v1589_v43  ;;  %1321 = vmatprep.mubr.msk.bf16.mxu1 %vm1465_vm0, %v1462_v7  ;;  %v944_v43 = vpop.permute.xlu1 %943 }
 0x216   : > { %1331 = vmatprep.subr.bf16.mxu1 %v1462_v7 }
 0x21c   : > { %1322 = vmatmul.mubr.msk.bf16.vlgmr.msra.gmra.mrb[4].mxu1 %vm423_vm2, %v629_v26 }
 0x21d   : > { %1332 = vmatpush3.bf16.xpose.msra.mxu1 %v790_v27  ;;  %1333 = vmatprep.mubr.msk.bf16.mxu1 %vm1465_vm0, %v1462_v7 }
 0x21e   : > { %1343 = vmatprep.subr.bf16.mxu1 %v1462_v7 }
 0x224   : > { %1334 = vmatmul.mubr.msk.bf16.vlgmr.msra.gmra.mrb[8].mxu1 %vm423_vm2, %v782_v28 }
 0x225   : > { %1344 = vmatpush3.bf16.xpose.msra.mxu1 %v790_v27  ;;  %1345 = vmatprep.mubr.msk.bf16.mxu1 %vm1465_vm0, %v1462_v7 }
 0x22c   : > { %1346 = vmatmul.mubr.msk.bf16.vlgmr.msra.gmra.mrb[12].mxu1 %vm423_vm2, %v944_v43 }
 0x2e7   : > { %v1687_v30 = vpop.f32.mrb[0].mxu1 }
 0x2e8   : > { %v1317_v31 = vpop.f32.mrb[1].mxu1 }
 0x2e9   : > { %v1689_v33 = vpop.f32.mrb[2].mxu1 }
 0x2ea   : > { %v1318_v34 = vpop.f32.mrb[3].mxu1 }
 0x2ef   : > { %v667_v35 = vpop.f32.mrb[4].mxu1 }
 0x2f0   : > { %v674_v36 = vmul.f32 0.35355338, %v667_v35  ;;  %v1323_v22 = vpop.f32.mrb[5].mxu1 }
 0x2f1   : > { %v670_v19 = vpop.f32.mrb[6].mxu1 }
 0x2f2   : > { %v675_v37 = vmul.f32 0.35355338, %v670_v19  ;;  %v1324_v38 = vpop.f32.mrb[7].mxu1  ;;  %v676_v39 = vsel %vm444_vm4, %v674_v36, -inf }
 0x2f3   : > { %v678_v2 = vsel %vm524_vm5, %v676_v39, -inf  ;;  %v537_v38 = vsel %vm524_vm5, %v1667_v21, 0.0 }
 0x2f4   : > { %679 = vmax.xlane.f32.xlu0 %v678_v2  ;;  %v677_v3 = vsel %vm445_vm6, %v675_v37, -inf }
 0x2f5   : > { %v681_v40 = vsel %vm524_vm5, %v677_v3, -inf }
 0x2f6   : > { %682 = vmax.xlane.f32.xlu1 %v681_v40 }
 0x2f7   : > { %v826_v41 = vpop.f32.mrb[8].mxu1 }
 0x2f8   : > { %v833_v42 = vmul.f32 0.35355338, %v826_v41  ;;  %v1335_v44 = vpop.f32.mrb[9].mxu1 }
 0x2f9   : > { %v829_v45 = vpop.f32.mrb[10].mxu1 }
 0x2fa   : > { %v834_v46 = vmul.f32 0.35355338, %v829_v45  ;;  %v1336_v47 = vpop.f32.mrb[11].mxu1  ;;  %v835_v48 = vsel %vm444_vm4, %v833_v42, -inf }
 0x2fb   : > { %v837_v49 = vsel %vm524_vm5, %v835_v48, -inf }
 0x2fc   : > { %838 = vmax.xlane.f32.xlu0 %v837_v49  ;;  %v836_v50 = vsel %vm445_vm6, %v834_v46, -inf }
 0x2fd   : > { %v840_v29 = vsel %vm524_vm5, %v836_v50, -inf }
 0x2ff   : > { %v982_v51 = vpop.f32.mrb[12].mxu1 }
 0x300   : > { %v989_v52 = vmul.f32 0.35355338, %v982_v51  ;;  %841 = vmax.xlane.f32.xlu0 %v840_v29  ;;  %v1347_v53 = vpop.f32.mrb[13].mxu1 }
 0x301   : > { %v985_v32 = vpop.f32.mrb[14].mxu1 }
 0x302   : > { %v990_v57 = vmul.f32 0.35355338, %v985_v32  ;;  %v1348_v58 = vpop.f32.mrb[15].mxu1  ;;  %v991_v59 = vsel %vm444_vm4, %v989_v52, -inf }
 0x303   : > { %v993_v60 = vsel %vm524_vm5, %v991_v59, -inf }
 0x304   : > { %994 = vmax.xlane.f32.xlu1 %v993_v60  ;;  %v992_v61 = vsel %vm445_vm6, %v990_v57, -inf }
 0x305   : > { %v996_v62 = vsel %vm524_vm5, %v992_v61, -inf }
 0x306   : > { %997 = vmax.xlane.f32.xlu0 %v996_v62 }
 0x315   : > { %856 = vrot.lane.b32.xlu1 %v1660_v15, %s1472_s26 }
 0x381   : > { %v680_v63 = vpop.xlane.xlu0 %679 }
 0x382   : > { %v684_v0 = vsub.f32 %v676_v39, %v680_v63  ;;  %v540_v39 = vsel %vm524_vm5, %v1669_v23, 0.0 }
 0x383   : > { %v683_v1 = vpop.xlane.xlu1 %682 }
 0x384   : > { %v686_v5 = vmul.f32 1.442695, %v684_v0  ;;  %v685_v6 = vsub.f32 %v677_v3, %v683_v1 }
 0x386   : > { %1426 = vpow2.f32 %v686_v5  ;;  %v688_v54 = vmul.f32 1.442695, %v685_v6 }
 0x388   : > { %1428 = vpow2.f32 %v688_v54 }
 0x389   : > { %v839_v9 = vpop.xlane.xlu0 %838 }
 0x38a   : > { %v843_v10 = vsub.f32 %v835_v48, %v839_v9 }
 0x38c   : > { %v845_v11 = vmul.f32 1.442695, %v843_v10 }
 0x38d   : > { %v842_v12 = vpop.xlane.xlu0 %841 }
 0x38e   : > { %1430 = vpow2.f32 %v845_v11  ;;  %v844_v55 = vsub.f32 %v836_v50, %v842_v12 }
 0x390   : > { %v1427_v56 = vpop.eup %1426  ;;  %v847_v13 = vmul.f32 1.442695, %v844_v55 }
 0x391   : > { %v995_v14 = vpop.xlane.xlu1 %994  ;;  %v690_v4 = vsel %vm524_vm5, %v1427_v56, 0.0 }
 0x392   : > { %v1429_v15 = vpop.eup %1428  ;;  %1432 = vpow2.f32 %v847_v13  ;;  %v999_v8 = vsub.f32 %v991_v59, %v995_v14  ;;  %691 = vadd.xlane.f32.xlu0 %v690_v4 }
 0x393   : > { %v998_v16 = vpop.xlane.xlu0 %997  ;;  %v696_v17 = vpack.c.bf16 %v1429_v15, %v1427_v56  ;;  %v693_v24 = vsel %vm524_vm5, %v1429_v15, 0.0 }
 0x394   : > { %v1001_v18 = vmul.f32 1.442695, %v999_v8  ;;  %v1000_v20 = vsub.f32 %v992_v61, %v998_v16 }
 0x395   : > { %1328 = vmatmul.mubr.msk.bf16.vlgmr.msra.gmra.mrb[4].mxu0 %vm524_vm5, %v696_v17  ;;  %v857_v25 = vpop.permute.xlu1 %856 }
 0x396   : > { %1434 = vpow2.f32 %v1001_v18  ;;  %v1003_v26 = vmul.f32 1.442695, %v1000_v20  ;;  %694 = vadd.xlane.f32.xlu0 %v693_v24  ;;  %1338 = vmatpush3.bf16.msra.mxu0 %v857_v25 }
 0x397   : > { %1339 = vmatprep.mubr.msk.bf16.mxu0 %vm1465_vm0, %v1462_v7  ;;  %1349 = vmatprep.subr.bf16.mxu0 %v1462_v7 }
 0x398   : > { %v1431_v27 = vpop.eup %1430  ;;  %1436 = vpow2.f32 %v1003_v26 }
 0x399   : > { %v849_v28 = vsel %vm524_vm5, %v1431_v27, 0.0 }
 0x39a   : > { %850 = vadd.xlane.f32.xlu0 %v849_v28 }
 0x39c   : > { %v1433_v43 = vpop.eup %1432 }
 0x39d   : > { %v852_v31 = vsel %vm524_vm5, %v1433_v43, 0.0  ;;  %v855_v34 = vpack.c.bf16 %v1433_v43, %v1431_v27 }
 0x39e   : > { %853 = vadd.xlane.f32.xlu0 %v852_v31 }
 0x39f   : > { %1340 = vmatmul.mubr.msk.bf16.vlgmr.msra.gmra.mrb[8].mxu0 %vm524_vm5, %v855_v34 }
 0x3a0   : > { %v1435_v35 = vpop.eup %1434  ;;  %1350 = vmatpush3.bf16.msra.mxu0 %v857_v25  ;;  %1351 = vmatprep.mubr.msk.bf16.mxu0 %vm1465_vm0, %v1462_v7 }
 0x3a1   : > { %v1005_v36 = vsel %vm524_vm5, %v1435_v35, 0.0 }
 0x3a2   : > { %v1437_v22 = vpop.eup %1436  ;;  %1006 = vadd.xlane.f32.xlu1 %v1005_v36 }
 0x3a3   : > { %v1008_v19 = vsel %vm524_vm5, %v1437_v22, 0.0  ;;  %v1011_v37 = vpack.c.bf16 %v1437_v22, %v1435_v35 }
 0x3a4   : > { %1009 = vadd.xlane.f32.xlu0 %v1008_v19 }
 0x3a7   : > { %1352 = vmatmul.mubr.msk.bf16.vlgmr.msra.gmra.mrb[12].mxu0 %vm524_vm5, %v1011_v37 }
 0x3a8   : > { %538 = vadd.xlane.f32.xlu0 %v537_v38 }
 0x3ac   : > { %541 = vadd.xlane.f32.xlu0 %v540_v39 }
 0x41f   : > { %v692_v2 = vpop.xlane.xlu0 %691 }
 0x420   : > { %1438 = vrcp.f32 %v692_v2 }
 0x423   : > { %v695_v7 = vpop.xlane.xlu0 %694 }
 0x424   : > { %1440 = vrcp.f32 %v695_v7 }
 0x427   : > { %v851_v3 = vpop.xlane.xlu0 %850 }
 0x428   : > { %1442 = vrcp.f32 %v851_v3 }
 0x42a   : > { %v1439_v42 = vpop.eup %1438 }
 0x42b   : > { %v854_v40 = vpop.xlane.xlu0 %853 }
 0x42c   : > { %1444 = vrcp.f32 %v854_v40 }
 0x42e   : > { %v1441_v45 = vpop.eup %1440 }
 0x42f   : > { %v1007_v50 = vpop.xlane.xlu1 %1006 }
 0x430   : > { %1446 = vrcp.f32 %v1007_v50 }
 0x431   : > { %v1010_v23 = vpop.xlane.xlu0 %1009 }
 0x432   : > { %1448 = vrcp.f32 %v1010_v23  ;;  %v1443_v29 = vpop.eup %1442 }
 0x435   : > { %v539_v10 = vpop.xlane.xlu0 %538 }
 0x436   : > { %v1445_v53 = vpop.eup %1444  ;;  %1450 = vrcp.f32 %v539_v10 }
 0x439   : > { %v542_v11 = vpop.xlane.xlu0 %541 }
 0x43a   : > { %v1447_v62 = vpop.eup %1446  ;;  %1452 = vrcp.f32 %v542_v11 }
 0x43c   : > { %v1449_v0 = vpop.eup %1448 }
 0x440   : > { %v1451_v55 = vpop.eup %1450 }
 0x441   : > { %v596_v16 = vmul.f32 %v1451_v55, %v1687_v30 }
 0x444   : > { %v1453_v13 = vpop.eup %1452 }
 0x445   : > { %v597_v17 = vmul.f32 %v1453_v13, %v1689_v33 }
 0x468   : > { %v734_v41 = vpop.f32.mrb[4].mxu0 }
 0x469   : > { %v1329_v44 = vpop.f32.mrb[5].mxu0  ;;  %v743_v47 = vmul.f32 %v1439_v42, %v734_v41 }
 0x46a   : > { %v737_v46 = vpop.f32.mrb[6].mxu0 }
 0x46b   : > { %v744_v21 = vmul.f32 %v1441_v45, %v737_v46  ;;  %v1330_v48 = vpop.f32.mrb[7].mxu0 }
 0x46d   : > { %v1406_v49 = vpack.i.bf16 %v744_v21, %v743_v47 }
 0x46f   : > { %1407 = vrot.lane.b32.xlu0 %v1406_v49, %s1469_s15 }
 0x472   : > { %v896_v51 = vpop.f32.mrb[8].mxu0 }
 0x473   : > { %v1341_v52 = vpop.f32.mrb[9].mxu0  ;;  %v905_v57 = vmul.f32 %v1443_v29, %v896_v51 }
 0x474   : > { %v899_v32 = vpop.f32.mrb[10].mxu0 }
 0x475   : > { %v906_v58 = vmul.f32 %v1445_v53, %v899_v32  ;;  %v1342_v59 = vpop.f32.mrb[11].mxu0 }
 0x477   : > { %v1411_v60 = vpack.i.bf16 %v906_v58, %v905_v57 }
 0x479   : > { %1412 = vrot.lane.b32.xlu0 %v1411_v60, %s1470_s16 }
 0x47a   : > { %v1049_v61 = vpop.f32.mrb[12].mxu0 }
 0x47b   : > { %v1353_v63 = vpop.f32.mrb[13].mxu0  ;;  %v1058_v5 = vmul.f32 %v1447_v62, %v1049_v61 }
 0x47c   : > { %v1052_v1 = vpop.f32.mrb[14].mxu0 }
 0x47d   : > { %v1059_v6 = vmul.f32 %v1449_v0, %v1052_v1  ;;  %v1354_v54 = vpop.f32.mrb[15].mxu0 }
 0x47f   : > { %v1416_v9 = vpack.i.bf16 %v1059_v6, %v1058_v5 }
 0x481   : > { %1417 = vrot.lane.b32.xlu1 %v1416_v9, %s1471_s17 }
 0x4e1   : > { %v1408_v12 = vpop.permute.xlu0 %1407 }
 0x4e2   : > { %v1410_v14 = vunpack.i.h.bf16 %v1408_v12  ;;  %v1409_v4 = vunpack.i.l.bf16 %v1408_v12 }
 0x4e4   : > { %v1085_v20 = vsel %vm423_vm2, %v597_v17, %v1410_v14  ;;  %v1084_v24 = vsel %vm423_vm2, %v596_v16, %v1409_v4 }
 0x4eb   : > { %v1413_v56 = vpop.permute.xlu0 %1412 }
 0x4ec   : > { %v1415_v15 = vunpack.i.h.bf16 %v1413_v56  ;;  %v1414_v8 = vunpack.i.l.bf16 %v1413_v56 }
 0x4ee   : > { %v1087_v27 = vsel %vm524_vm5, %v1085_v20, %v1415_v15  ;;  %v1086_v28 = vsel %vm524_vm5, %v1084_v24, %v1414_v8 }
 0x4f3   : > { %v1418_v18 = vpop.permute.xlu1 %1417 }
 0x4f4   : > { %v1420_v25 = vunpack.i.h.bf16 %v1418_v18  ;;  %v1419_v26 = vunpack.i.l.bf16 %v1418_v18 }
 0x4f6   : > { %v1090_v30 = vsel %vm1088_vm7, %v1087_v27, %v1420_v25  ;;  %v1089_v43 = vsel %vm1088_vm7, %v1086_v28, %v1419_v26 }
 0x4f7   : > { %v1282_v33 = vpack.c.bf16 %v1090_v30, %v1090_v30  ;;  %v1281_v31 = vpack.c.bf16 %v1089_v43, %v1089_v43 }
 0x4f9   : > { %1101 = vst.msk [vmem:[%s339_s10 + $0x4] sm:$0xf] %vm1099_vm8, %v1282_v33  ;;  %1100 = vst.msk [vmem:[%s339_s10] sm:$0xf] %vm1099_vm8, %v1281_v31 }
 0x4fa PF: > { %s17_s21 = sadd.s32 1, %s1460_s21  }
 0x4fb   : > { %p14_p4 = scmp.ge.s32.totalorder %s17_s21, 4  }
 0x4fd   :  { %16 = sbr.rel (!%p14_p4) target bundleno = 1 (0x1), region = 94 }

</bundles_post_ra>
